<compile_context>
chip_gen: v7x
topology: tpu7x:2x2x1
jax: 0.10.0
libtpu: 0.0.40
codegen_flags: <defaults>
</compile_context>

<pallas_src>
import functools
import math

import jax
import jax.numpy as jnp
import numpy as np
from jax.experimental import pallas as pl
from jax.experimental.pallas import tpu as pltpu


def _freq_encoding_kernel(x_ref, e_ref, b_ref, o_ref):
    # x_ref: (tm, fin) f32, e_ref: (fin, fout) bf16 (powers of two, exact),
    # b_ref: (1, fout) f32 phase row (0 for sin cols, pi/2 for cos cols),
    # o_ref: (tm, fout) out dtype.
    x = x_ref[...]
    # Exact 3-chunk bf16 split of f32 x (E is exactly bf16, so 3 DEFAULT-precision
    # dots reproduce the f32 product x * 2^f to ~0.5 ulp).
    x_hi = x.astype(jnp.bfloat16)
    r1 = x - x_hi.astype(jnp.float32)
    x_mid = r1.astype(jnp.bfloat16)
    x_lo = (r1 - x_mid.astype(jnp.float32)).astype(jnp.bfloat16)

    e = e_ref[...]
    acc = jnp.dot(x_hi, e, preferred_element_type=jnp.float32)
    acc = acc + jnp.dot(x_mid, e, preferred_element_type=jnp.float32)
    acc = acc + jnp.dot(x_lo, e, preferred_element_type=jnp.float32)

    # cos(t) == sin(t + pi/2): single transcendental, no mask / select.
    o_ref[...] = jnp.sin(acc + b_ref[...]).astype(o_ref.dtype)


@functools.lru_cache(maxsize=None)
def _expansion_tables(in_dim: int, n_freq: int, k: int):
    """E[j*in_dim+d, j*out_dim + {0, half} + d*n_freq + f] = 2^f  (block-diagonal over k
    folded points), plus the (1, k*out_dim) phase row (0 / pi/2)."""
    half = in_dim * n_freq
    out_dim = 2 * half
    e = np.zeros((k * in_dim, k * out_dim), dtype=np.float32)
    for j in range(k):
        for d in range(in_dim):
            for f in range(n_freq):
                v = float(2.0 ** f)
                r = j * in_dim + d
                c = j * out_dim + d * n_freq + f
                e[r, c] = v           # sin position
                e[r, c + half] = v    # cos position
    bias = np.zeros((1, k * out_dim), dtype=np.float32)
    for j in range(k):
        bias[0, j * out_dim + half:(j + 1) * out_dim] = np.pi / 2.0
    # Powers of two are exact in bf16 -> halves E's DMA + VMEM footprint.
    return jnp.asarray(e, dtype=jnp.bfloat16), jnp.asarray(bias, dtype=jnp.float32)


def _round_up(v: int, m: int) -> int:
    return ((v + m - 1) // m) * m


def frequency_encoding(x: jax.Array, n_freq: int, *, tm: int | None = None,
                       out_dtype=jnp.float32) -> jax.Array:
    """x: (n_pts, in_dim) -> (n_pts, in_dim * n_freq * 2)."""
    n_pts, in_dim = x.shape
    half = in_dim * n_freq
    out_dim = 2 * half

    # Fold k points per kernel row so the output block width is a multiple of 128 lanes.
    k = 128 // math.gcd(out_dim, 128)
    # Keep the (k*in_dim, k*out_dim) expansion matrix modest for awkward out_dims.
    while k > 1 and (k * in_dim) * (k * out_dim) * 2 > (4 << 20):
        k //= 2
    fin, fout = k * in_dim, k * out_dim

    rows = pl.cdiv(n_pts, k)
    rows8 = _round_up(rows, 8)            # pad rows only to the 8-sublane multiple

    # Row-tile from a VMEM budget: x double-buffer (f32) + out double-buffer (out dtype)
    # + the f32 MXU-result buffer.  E / bias are small and counted separately below.
    out_bytes = jnp.dtype(out_dtype).itemsize
    per_row = fin * 4 * 2 + fout * out_bytes * 2 + fout * 4
    budget = 16 << 20
    tm_cap = max(8, min((budget // per_row) // 8 * 8, rows8))
    if tm is not None:
        tm_cap = max(8, min(tm_cap, _round_up(tm, 8)))

    g = pl.cdiv(rows8, tm_cap)
    if g == 1 and rows8 >= 64:
        g = 2                              # give both v7x TensorCores a step
    if g > 1 and g % 2:
        g += 1                             # keep the two-TC split balanced
    tm_eff = max(8, min(tm_cap, _round_up(pl.cdiv(rows8, g), 8)))
    grid_rows = pl.cdiv(rows8, tm_eff)     # final block may be partial (Pallas masks it)

    e, bias = _expansion_tables(in_dim, n_freq, k)

    # Pad points with zeros only up to rows8*k (at most 8*k extra points).
    n_src = rows8 * k
    xf = x.astype(jnp.float32)
    if n_src != n_pts:
        xf = jnp.pad(xf, ((0, n_src - n_pts), (0, 0)))
    xf = xf.reshape(rows8, fin)            # row-major fold: metadata only

    vmem_need = (tm_eff * per_row
                 + 2 * e.size * e.dtype.itemsize      # E (possibly double-buffered)
                 + 2 * 8 * fout * 4                   # phase row (sublane-padded)
                 + (1 << 20))                         # misc slack
    vmem_limit = int(min(40 << 20, max(32 << 20, 2 * vmem_need)))

    out_folded = pl.pallas_call(
        _freq_encoding_kernel,
        out_shape=jax.ShapeDtypeStruct((rows8, fout), out_dtype),
        grid_spec=pltpu.PrefetchScalarGridSpec(
            num_scalar_prefetch=0,
            grid=(grid_rows,),
            in_specs=[
                pl.BlockSpec((tm_eff, fin), lambda i: (i, 0)),
                pl.BlockSpec((fin, fout), lambda i: (0, 0)),   # E stays resident in VMEM
                pl.BlockSpec((1, fout), lambda i: (0, 0)),     # phase row stays resident
            ],
            out_specs=pl.BlockSpec((tm_eff, fout), lambda i: (i, 0)),
        ),
        compiler_params=pltpu.CompilerParams(
            dimension_semantics=("parallel",),
            vmem_limit_bytes=vmem_limit,
        ),
    )(xf, e, bias)

    out = out_folded.reshape(n_src, out_dim)   # row-major unfold: metadata only
    if n_src == n_pts:
        return out
    # TODO(synk): fuse this un-pad slice into the consumer when possible to avoid the copy.
    return out[:n_pts]


def frequency_encoding_ref(x: jax.Array, n_freq: int) -> jax.Array:
    """Pure-JAX reference matching the PyTorch forward exactly."""
    n_pts, in_dim = x.shape
    freqs = 2.0 ** jnp.arange(n_freq, dtype=jnp.float32)
    enc = (x[..., None] * freqs).reshape(n_pts, in_dim * n_freq)
    return jnp.concatenate([jnp.sin(enc), jnp.cos(enc)], axis=-1)


if __name__ == "__main__":
    in_dim, n_freq = 4, 8   # out_dim = 4 * 8 * 2 = 64, fold factor k = 2
    key = jax.random.PRNGKey(0)

    # n_pts cases: exact fit (16), ragged point padding + un-pad slice (13),
    # and a 2-step parallel grid with a partial final block (624).
    for n_pts in (16, 13, 624):
        x = jax.random.normal(jax.random.fold_in(key, n_pts), (n_pts, in_dim),
                              dtype=jnp.float32)
        out = jax.block_until_ready(frequency_encoding(x, n_freq))
        ref = frequency_encoding_ref(x, n_freq)
        assert out.shape == (n_pts, in_dim * n_freq * 2)
        # Arguments reach ~|x| * 2^(n_freq-1); the exact 3-pass split + phase-shifted sin
        # keep absolute argument error ~ a few ulps (~5e-5 here), well inside 3e-4.
        assert jnp.allclose(out, ref, atol=3e-4, rtol=1e-4), f"mismatch at n_pts={n_pts}"

    print("KERNEL_OK")
</pallas_src>

<mosaic_0001>
module attributes {stable_mosaic.version = 11 : i64} {
  func.func @_freq_encoding_kernel(%arg0: i32, %arg1: memref<8x8xf32, #tpu.memory_space<vmem>>, %arg2: memref<8x128xbf16, #tpu.memory_space<vmem>>, %arg3: memref<1x128xf32, #tpu.memory_space<vmem>>, %arg4: memref<8x128xf32, #tpu.memory_space<vmem>>) attributes {dimension_semantics = [#tpu.dimension_semantics<parallel>], iteration_bounds = array<i64: 1>, scalar_prefetch = 0 : i64, scratch_operands = 0 : i64, tpu.core_type = #tpu.core_type<tc>, window_params = [{transform_indices = @transform_0, window_bounds = array<i64: 8, 8>}, {pipeline_mode = #tpu.pipeline_mode<synchronous>, transform_indices = @transform_1, window_bounds = array<i64: 8, 128>}, {pipeline_mode = #tpu.pipeline_mode<synchronous>, transform_indices = @transform_2, window_bounds = array<i64: 1, 128>}, {transform_indices = @transform_3, window_bounds = array<i64: 8, 128>}]} {
    %c0 = arith.constant 0 : index
    %c0_0 = arith.constant 0 : index
    %0 = vector.load %arg1[%c0, %c0_0] : memref<8x8xf32, #tpu.memory_space<vmem>>, vector<8x8xf32>
    %1 = arith.truncf %0 : vector<8x8xf32> to vector<8x8xbf16>
    %2 = arith.extf %1 : vector<8x8xbf16> to vector<8x8xf32>
    %3 = arith.subf %0, %2 : vector<8x8xf32>
    %4 = arith.truncf %3 : vector<8x8xf32> to vector<8x8xbf16>
    %5 = arith.extf %4 : vector<8x8xbf16> to vector<8x8xf32>
    %6 = arith.subf %3, %5 : vector<8x8xf32>
    %7 = arith.truncf %6 : vector<8x8xf32> to vector<8x8xbf16>
    %c0_1 = arith.constant 0 : index
    %c0_2 = arith.constant 0 : index
    %8 = vector.load %arg2[%c0_1, %c0_2] : memref<8x128xbf16, #tpu.memory_space<vmem>>, vector<8x128xbf16>
    %cst = arith.constant dense<0.000000e+00> : vector<8x128xf32>
    %9 = tpu.matmul %1, %8, %cst {dimension_numbers = #tpu.dot_dimension_numbers<[1], [0], [0], [1], [0, 0, 1, 1], [], []>} : vector<8x8xbf16>, vector<8x128xbf16>, vector<8x128xf32> -> vector<8x128xf32>
    %cst_3 = arith.constant dense<0.000000e+00> : vector<8x128xf32>
    %10 = tpu.matmul %4, %8, %cst_3 {dimension_numbers = #tpu.dot_dimension_numbers<[1], [0], [0], [1], [0, 0, 1, 1], [], []>} : vector<8x8xbf16>, vector<8x128xbf16>, vector<8x128xf32> -> vector<8x128xf32>
    %11 = arith.addf %9, %10 : vector<8x128xf32>
    %cst_4 = arith.constant dense<0.000000e+00> : vector<8x128xf32>
    %12 = tpu.matmul %7, %8, %cst_4 {dimension_numbers = #tpu.dot_dimension_numbers<[1], [0], [0], [1], [0, 0, 1, 1], [], []>} : vector<8x8xbf16>, vector<8x128xbf16>, vector<8x128xf32> -> vector<8x128xf32>
    %13 = arith.addf %11, %12 : vector<8x128xf32>
    %c0_5 = arith.constant 0 : index
    %c0_6 = arith.constant 0 : index
    %14 = vector.load %arg3[%c0_5, %c0_6] : memref<1x128xf32, #tpu.memory_space<vmem>>, vector<1x128xf32>
    %15 = vector.broadcast %14 : vector<1x128xf32> to vector<8x128xf32>
    %16 = arith.addf %13, %15 : vector<8x128xf32>
    %17 = math.sin %16 : vector<8x128xf32>
    %c0_7 = arith.constant 0 : index
    %c0_8 = arith.constant 0 : index
    %18 = vector.load %arg4[%c0_7, %c0_8] : memref<8x128xf32, #tpu.memory_space<vmem>>, vector<8x128xf32>
    tpu.vector_store %arg4[%c0_7, %c0_8], %17 {strides = array<i32>} : memref<8x128xf32, #tpu.memory_space<vmem>>, vector<8x128xf32>,
    return
  }
  func.func @transform_0(%arg0: i32) -> (i32, i32) {
    %c0_i32 = arith.constant 0 : i32
    %c0_i32_0 = arith.constant 0 : i32
    return %arg0, %c0_i32 : i32, i32
  }
  func.func @transform_1(%arg0: i32) -> (i32, i32) {
    %c0_i32 = arith.constant 0 : i32
    %c0_i32_0 = arith.constant 0 : i32
    %c0_i32_1 = arith.constant 0 : i32
    return %c0_i32, %c0_i32_0 : i32, i32
  }
  func.func @transform_2(%arg0: i32) -> (i32, i32) {
    %c0_i32 = arith.constant 0 : i32
    %c0_i32_0 = arith.constant 0 : i32
    %c0_i32_1 = arith.constant 0 : i32
    return %c0_i32, %c0_i32_0 : i32, i32
  }
  func.func @transform_3(%arg0: i32) -> (i32, i32) {
    %c0_i32 = arith.constant 0 : i32
    %c0_i32_0 = arith.constant 0 : i32
    return %arg0, %c0_i32 : i32, i32
  }
}

</mosaic_0001>

<bundles_post_ra>
// kernel: tpu_custom_call.1
= control target key start
LH: loop header
LB: loop body
LE: loop exit
PB: predicated region body
PF: predicated region fallthrough
CT: control target
= control target key end

     0   :  { %8 = vsyncpa [#allocation3], 0  ;;  %s530_s0 = inlined_call_operand.hbm [shape: f32[8,8], index: 0, kind: input, shape index: {}]   ;;  %s531_s1 = inlined_call_operand.hbm [shape: bf16[8,128], index: 1, kind: input, shape index: {}]   ;;  %s532_s2 = inlined_call_operand.vmem [shape: f32[1,128], index: 2, kind: input, shape index: {}]   ;;  %s533_s3 = inlined_call_operand.hbm [shape: f32[8,128], index: 3, kind: output, shape index: {}]  }
   0x1   :  { %9 = vsyncpa [#allocation6], 0 }
   0x2   :  { %10 = vsyncpa [#allocation4], 0  ;;  %s436_s12 = smov [#allocation2]   ;;  %s437_s14 = smov [#allocation5]  }
   0x3   :  { %s17_s13 = sshll.u32 %s436_s12, 4  ;;  %s27_s15 = sshll.u32 %s437_s14, 4  ;;  %s18_s13 = int_to_ptr.vmem [resolvable:$true] %s17_s13  ;;  %s28_s15 = int_to_ptr.vmem [resolvable:$true] %s27_s15 }
   0x4   :  { %s364_s18 = scalar_lea.hbm %s530_s0, 128 }
   0x5   :  { %p365_p0 = scmp.ne.s32.totalorder %s530_s0, %s364_s18  ;;  %p368_p1 = scmp.lt.u32.totalorder %s364_s18, %s530_s0 }
   0x7   :  { %p370_p2 = pnand %p368_p1, %p365_p0 }
   0x9   :  { %373 = shalt.err (!%p370_p2)
}
   0xa   :  { %s374_s23 = scalar_lea.vmem %s18_s13, 128  ;;  %p379_p4 = scmp.lt.s32.totalorder %s18_s13, %s18_s13 }
   0xb   :  { %p375_p3 = scmp.ne.s32.totalorder %s18_s13, %s374_s23  ;;  %p380_p5 = scmp.lt.s32.totalorder %s374_s23, %s374_s23 }
   0xd   :  { %p381_p6 = por %p380_p5, %p379_p4 }
   0xf   :  { %p382_p7 = pnand %p381_p6, %p375_p3 }
  0x11   :  { %385 = shalt.err (!%p382_p7)
}
  0x12   :  { %20 = dma.hbm_to_vmem [thread:$0]  %s530_s0, 128, %s18_s13, [#allocation3]  }
  0x13   :  { %s386_s28 = scalar_lea.hbm %s531_s1, 64 }
  0x14   :  { %p387_p8 = scmp.ne.s32.totalorder %s531_s1, %s386_s28  ;;  %p390_p9 = scmp.lt.u32.totalorder %s386_s28, %s531_s1 }
  0x16   :  { %p392_p10 = pnand %p390_p9, %p387_p8 }
  0x18   :  { %395 = shalt.err (!%p392_p10)
}
  0x19   :  { %s396_s6 = scalar_lea.vmem %s28_s15, 64  ;;  %p401_p12 = scmp.lt.s32.totalorder %s28_s15, %s28_s15 }
  0x1a   :  { %p397_p11 = scmp.ne.s32.totalorder %s28_s15, %s396_s6  ;;  %p402_p13 = scmp.lt.s32.totalorder %s396_s6, %s396_s6 }
  0x1c   :  { %p403_p0 = por %p402_p13, %p401_p12 }
  0x1e   :  { %p404_p1 = pnand %p403_p0, %p397_p11 }
  0x20   :  { %407 = shalt.err (!%p404_p1)
}
  0x21   :  { %30 = dma.hbm_to_vmem [thread:$0]  %s531_s1, 64, %s28_s15, [#allocation6]  }
  0x22   :  { %430 = dma.done.wait [#allocation3], 128  }
  0x23   :  { %431 = vsyncadd [#allocation3], 4294967168 }
  0x24   :  { %432 = dma.done.wait [#allocation6], 64  }
  0x25   :  { %433 = vsyncadd [#allocation6], 4294967232  ;;  %v438_v0 = vmov 0.0   ;;  %vm439_vm0 = vmmov 0   ;;  %vm53_vm1 = vcmask 1043456   ;;  %v40_v2 = vld [vmem:[#allocation2] sm:$0xff] }
  0x26   :  { %327 = vmatprep.subr.bf16.mxu0 %v438_v0  ;;  %333 = vmatprep.subr.bf16.mxu1 %v438_v0  ;;  %v48_v1 = vld [vmem:[#allocation5] sm:$0xf]  ;;  %v41_v4 = vpack.c.bf16 %v40_v2, %v40_v2  ;;  %vm49_vm2 = vcmask 64512   ;;  %v316_v21 = vld [vmem:[%s532_s2] ss:$0 sm:$0xff]  ;;  %s446_s2 = smov [#allocation7]  }
  0x27   :  { %329 = vmatprep.mubr.msk.bf16.mxu0 %vm439_vm0, %v438_v0  ;;  %335 = vmatprep.mubr.msk.bf16.mxu1 %vm439_vm0, %v438_v0  ;;  %v55_v3 = vsel %vm53_vm1, %v48_v1, 0  ;;  %v440_v38 = vmov 2102212464   ;;  %v441_v40 = vmov 920167782   ;;  %s303_s9 = sshll.u32 %s446_s2, 4  ;;  %s304_s9 = int_to_ptr.vmem [resolvable:$true] %s303_s9 }
  0x28   :  { %328 = vmatpush3.bf16.msra.mxu0 %v55_v3  ;;  %334 = vmatpush3.bf16.msra.mxu1 %v55_v3  ;;  %v42_v5 = vunpack.c.l.bf16 %v41_v4  ;;  %v442_v44 = vmov 1326507024   ;;  %v443_v46 = vmov 683565275   ;;  %v444_v48 = vmov 2475754826   ;;  %p413_p3 = scmp.lt.s32.totalorder %s304_s9, %s304_s9 }
  0x29   :  { %339 = vmatprep.subr.bf16.mxu0 %v438_v0  ;;  %v445_v51 = vmov 2131351028   ;;  %s408_s10 = scalar_lea.vmem %s304_s9, 128 }
  0x2a   :  { %v43_v6 = vsub.f32 %v40_v2, %v42_v5  ;;  %p409_p2 = scmp.ne.s32.totalorder %s304_s9, %s408_s10  ;;  %p414_p4 = scmp.lt.s32.totalorder %s408_s10, %s408_s10 }
  0x2b   :  { %336 = vmatmul.mubr.msk.bf16.vlgmr.msra.gmra.mrb[0].mxu1 %vm49_vm2, %v41_v4 }
  0x2c   :  { %v44_v7 = vpack.c.bf16 %v43_v6, %v43_v6  ;;  %p415_p5 = por %p414_p4, %p413_p3 }
  0x2e   :  { %v45_v8 = vunpack.c.l.bf16 %v44_v7  ;;  %330 = vmatmul.mubr.msk.bf16.vlgmr.msra.gmra.mrb[0].mxu0 %vm49_vm2, %v44_v7  ;;  %p416_p6 = pnand %p415_p5, %p409_p2 }
  0x2f   :  { %340 = vmatpush3.bf16.msra.mxu0 %v55_v3  ;;  %341 = vmatprep.mubr.msk.bf16.mxu0 %vm439_vm0, %v438_v0 }
  0x30   :  { %v46_v9 = vsub.f32 %v43_v6, %v45_v8 }
  0x32   :  { %v47_v10 = vpack.c.bf16 %v46_v9, %v46_v9 }
  0x36   :  { %342 = vmatmul.mubr.msk.bf16.vlgmr.msra.gmra.mrb[4].mxu0 %vm49_vm2, %v47_v10 }
  0xfe   :  { %v134_v11 = vpop.f32.mrb[0].mxu1 }
  0xff   :  { %v337_v12 = vpop.f32.mrb[1].mxu1 }
 0x100   :  { %v137_v13 = vpop.f32.mrb[2].mxu1 }
 0x101   :  { %v338_v14 = vpop.f32.mrb[3].mxu1  ;;  %v91_v15 = vpop.f32.mrb[0].mxu0 }
 0x102   :  { %v135_v16 = vadd.f32 %v134_v11, %v91_v15  ;;  %v331_v17 = vpop.f32.mrb[1].mxu0 }
 0x103   :  { %v94_v18 = vpop.f32.mrb[2].mxu0 }
 0x104   :  { %v332_v19 = vpop.f32.mrb[3].mxu0 }
 0x109   :  { %v177_v20 = vpop.f32.mrb[4].mxu0 }
 0x10a   :  { %v183_v22 = vadd.f32 %v177_v20, %v135_v16  ;;  %v343_v23 = vpop.f32.mrb[5].mxu0 }
 0x10b   :  { %v180_v24 = vpop.f32.mrb[6].mxu0 }
 0x10c   :  { %v497_v25 = vadd.f32 %v316_v21, %v183_v22  ;;  %v344_v26 = vpop.f32.mrb[7].mxu0 }
 0x10e   :  { %v195_v27 = vand.u32 2139095040, %v497_v25  ;;  %v192_v28 = vand.u32 2147483647, %v497_v25  ;;  %vm194_vm10 = vcmp.lt.s32.totalorder %v497_v25, 0  ;;  %vm284_vm15 = vweird.f32 %v497_v25 }
 0x110   :  { %v196_v29 = vshrl.u32 %v195_v27, 23  ;;  %v199_v31 = vand.u32 8388607, %v192_v28  ;;  %vm193_vm11 = vcmp.le.f32.partialorder %v192_v28, 0.7853982 }
 0x112   :  { %v317_v30 = vadd.s32 4294967169, %v196_v29  ;;  %v200_v34 = vor.u32 8388608, %v199_v31 }
 0x114   :  { %v202_v32 = vadd.s32 1, %v317_v30  ;;  %v240_v42 = vshll.u32 %v200_v34, 8 }
 0x116   :  { %vm203_vm3 = vcmp.gt.s32.totalorder %v202_v32, 0 }
 0x117   :  { %v204_v33 = vsel %vm203_vm3, %v202_v32, 0 }
 0x118   :  { %v206_v35 = vand.u32 31, %v204_v33  ;;  %v205_v36 = vshrl.u32 %v204_v33, 5 }
 0x11a   :  { %v207_v37 = vsub.s32 32, %v206_v35  ;;  %v218_v39 = vshll.u32 %v440_v38, %v206_v35  ;;  %v221_v41 = vshll.u32 %v441_v40, %v206_v35  ;;  %v209_v47 = vshll.u32 %v443_v46, %v206_v35 }
 0x11b   :  { %v212_v50 = vshll.u32 %v444_v48, %v206_v35  ;;  %v215_v53 = vshll.u32 %v445_v51, %v206_v35  ;;  %vm227_vm4 = vcmp.lt.s32.totalorder %v205_v36, 4  ;;  %vm224_vm5 = vcmp.lt.s32.totalorder %v205_v36, 1 }
 0x11c   :  { %v219_v43 = vshrl.u32 %v441_v40, %v207_v37  ;;  %v222_v45 = vshrl.u32 %v442_v44, %v207_v37  ;;  %v210_v49 = vshrl.u32 %v444_v48, %v207_v37  ;;  %v213_v52 = vshrl.u32 %v445_v51, %v207_v37 }
 0x11d   :  { %v216_v54 = vshrl.u32 %v440_v38, %v207_v37  ;;  %v208_v58 = vshrl.u32 %v443_v46, %v207_v37  ;;  %vm225_vm6 = vcmp.lt.s32.totalorder %v205_v36, 2  ;;  %vm226_vm7 = vcmp.lt.s32.totalorder %v205_v36, 3 }
 0x11e   :  { %v220_v55 = vor.u32 %v219_v43, %v218_v39  ;;  %v223_v56 = vor.u32 %v222_v45, %v221_v41  ;;  %v211_v57 = vor.u32 %v210_v49, %v209_v47  ;;  %v214_v59 = vor.u32 %v213_v52, %v212_v50 }
 0x11f   :  { %v217_v60 = vor.u32 %v216_v54, %v215_v53 }
 0x120   :  { %v233_v61 = vsel %vm227_vm4, %v220_v55, 920167782  ;;  %v237_v62 = vsel %vm227_vm4, %v223_v56, 1326507024  ;;  %v232_v0 = vsel %vm224_vm5, %v211_v57, %v214_v59  ;;  %v228_v3 = vsel %vm224_vm5, %v208_v58, %v211_v57 }
 0x121   :  { %v229_v63 = vsel %vm227_vm4, %v217_v60, 2102212464  ;;  %v234_v1 = vsel %vm226_vm7, %v217_v60, %v233_v61  ;;  %v236_v2 = vsel %vm224_vm5, %v214_v59, %v217_v60  ;;  %v238_v6 = vsel %vm226_vm7, %v220_v55, %v237_v62 }
 0x122   :  { %v230_v4 = vsel %vm226_vm7, %v214_v59, %v229_v63  ;;  %v235_v5 = vsel %vm225_vm6, %v232_v0, %v234_v1  ;;  %v239_v7 = vsel %vm225_vm6, %v236_v2, %v238_v6 }
 0x123   :  { %v503_v8 = vmul.u32.u64.low %v240_v42, %v235_v5  ;;  %v504_v9 = vmul.u32.u64.high %v240_v42, %v235_v5, %v503_v8  ;;  %v506_v10 = vmul.u32.u64.low %v240_v42, %v239_v7  ;;  %v507_v11 = vmul.u32.u64.high %v240_v42, %v239_v7, %v506_v10 }
 0x124   :  { %v231_v12 = vsel %vm225_vm6, %v228_v3, %v230_v4 }
 0x125   :  { %v250_v13 = vadd.s32 1, %v504_v9  ;;  %v247_v14 = vmul.u32 %v240_v42, %v231_v12  ;;  %vm249_vm8 = vc.u32 %v507_v11, %v503_v8  ;;  %v248_v27 = vadd.s32 %v503_v8, %v507_v11 }
 0x127   :  { %v251_v15 = vsel %vm249_vm8, %v250_v13, %v504_v9 }
 0x128   :  { %v252_v16 = vadd.s32 %v251_v15, %v247_v14 }
 0x12a   :  { %v253_v17 = vadd.s32 536870912, %v252_v16 }
 0x12c   :  { %v254_v18 = vshrl.u32 %v253_v17, 30 }
 0x12e   :  { %v255_v19 = vshll.u32 %v254_v18, 30  ;;  %v278_v40 = vsub.s32 4, %v254_v18 }
 0x130   :  { %v256_v20 = vsub.s32 %v252_v16, %v255_v19  ;;  %v279_v43 = vsel %vm194_vm10, %v278_v40, %v254_v18 }
 0x131   :  { %v281_v45 = vsel %vm193_vm11, 0, %v279_v43 }
 0x132   :  { %v258_v21 = vsub.s32 0, %v256_v20  ;;  %v285_v46 = vadd.s32 3, %v281_v45 }
 0x134   :  { %v318_v22 = vmin.u32 %v258_v21, %v256_v20  ;;  %v286_v47 = vand.u32 3, %v285_v46 }
 0x136   :  { %v260_v23 = vclz %v318_v22  ;;  %vm291_vm12 = vcmp.eq.s32.totalorder %v286_v47, 2  ;;  %vm288_vm13 = vcmp.eq.s32.totalorder %v286_v47, 0  ;;  %vm287_vm14 = vcmp.lt.s32.totalorder %v286_v47, 2 }
 0x138   :  { %v319_v24 = vadd.s32 4294967294, %v260_v23 }
 0x13a   :  { %vm320_vm9 = vcmp.lt.s32.totalorder %v319_v24, 0 }
 0x13b   :  { %v263_v26 = vsel %vm320_vm9, 0, %v319_v24 }
 0x13c   :  { %v264_v29 = vsub.s32 32, %v263_v26  ;;  %v268_v30 = vsub.s32 4294967266, %v263_v26  ;;  %v265_v31 = vshll.u32 %v256_v20, %v263_v26 }
 0x13e   :  { %v266_v32 = vshrl.u32 %v248_v27, %v264_v29  ;;  %v269_v33 = vadd.s32 127, %v268_v30 }
 0x140   :  { %v267_v34 = vor.u32 %v266_v32, %v265_v31  ;;  %v270_v35 = vshll.u32 %v269_v33, 23 }
 0x142   :  { %v271_v36 = vor.u32 4788187, %v270_v35  ;;  %v274_v38 = vcvt.s32.f32 %v267_v34 }
 0x144   :  { %v272_v37 = vand.u32 2147483647, %v271_v36 }
 0x146   :  { %v275_v39 = vmul.f32 %v274_v38, %v272_v37 }
 0x148   :  { %v276_v41 = vxor.u32 2147483648, %v275_v39 }
 0x14a   :  { %v277_v42 = vsel %vm194_vm10, %v276_v41, %v275_v39 }
 0x14b   :  { %v280_v44 = vsel %vm193_vm11, %v497_v25, %v277_v42 }
 0x14c   :  { %360 = vcosq.f32 %v280_v44 }
 0x14d   :  { %362 = vsinq.f32 %v280_v44 }
 0x156   :  { %v361_v48 = vpop.eup %360 }
 0x157   :  { %v363_v49 = vpop.eup %362  ;;  %v292_v50 = vxor.u32 2147483648, %v361_v48 }
 0x158   :  { %v289_v51 = vxor.u32 2147483648, %v363_v49 }
 0x159   :  { %v293_v52 = vsel %vm291_vm12, %v292_v50, %v363_v49 }
 0x15a   :  { %v290_v28 = vsel %vm288_vm13, %v361_v48, %v289_v51 }
 0x15b   :  { %v294_v53 = vsel %vm287_vm14, %v290_v28, %v293_v52 }
 0x15c   :  { %v295_v54 = vsel %vm284_vm15, nan, %v294_v53 }
 0x15d   :  { %296 = vst [vmem:[#allocation7] sm:$0xff] %v295_v54 }
 0x15e   :  { %419 = shalt.err (!%p416_p6)
}
 0x15f   :  { %s420_s13 = scalar_lea.hbm %s533_s3, 128 }
 0x160   :  { %p421_p7 = scmp.ne.s32.totalorder %s533_s3, %s420_s13  ;;  %p424_p8 = scmp.lt.u32.totalorder %s420_s13, %s533_s3 }
 0x162   :  { %p426_p9 = pnand %p424_p8, %p421_p7 }
 0x164   :  { %429 = shalt.err (!%p426_p9)
}
 0x165   :  { %306 = dma.vmem_to_hbm [thread:$0]  %s304_s9, 128, %s533_s3, [#allocation4]  }
 0x166   :  { %434 = dma.done.wait [#allocation4], 128  }
 0x167   :  { %435 = vsyncadd [#allocation4], 4294967168 }
 0x168   :  { %310 = vsyncpa [#allocation3], 1 }
 0x169   :  { %311 = vsyncpa [#allocation6], 1 }
 0x16a   :  { %312 = vsyncpa [#allocation4], 1 }

</bundles_post_ra>
